<compile_context>
chip_gen: v7x
topology: tpu7x:2x2x1
jax: 0.10.0
libtpu: 0.0.40
codegen_flags: <defaults>
</compile_context>

<pallas_src>
import functools

import jax
import jax.numpy as jnp
from jax import lax
from jax.experimental import pallas as pl
from jax.experimental.pallas import tpu as pltpu


def _round_up(x, m):
    return (x + m - 1) // m * m


def _row_tiles(m, tm):
    tm = min(tm, _round_up(m, 8))
    return tm, _round_up(m, tm)


# ---------------------------------------------------------------------------
# Kernels
# ---------------------------------------------------------------------------

def _gemm_bias_relu_kernel(x_ref, w_ref, b_ref, o_ref):
    """One conv layer as GEMM: o = relu(x @ w + b) for one (tm, n_pad) tile."""
    acc = jnp.dot(x_ref[...], w_ref[...], preferred_element_type=jnp.float32)
    acc = jnp.maximum(acc + b_ref[...], 0.0)
    o_ref[...] = acc.astype(o_ref.dtype)


def _apply_norm(y, n_valid, norm):
    """Row-wise normalization over the last dim, restricted to the first
    n_valid (unpadded) lanes.  Matches torch.nn.functional.normalize / softmax."""
    if norm is None:
        return y
    valid = lax.broadcasted_iota(jnp.int32, y.shape, 1) < n_valid
    if norm == "l2":
        ss = jnp.sum(jnp.where(valid, y * y, 0.0), axis=-1, keepdims=True)
        return y / jnp.maximum(jnp.sqrt(ss), 1e-12)
    if norm == "l1":
        s = jnp.sum(jnp.where(valid, jnp.abs(y), 0.0), axis=-1, keepdims=True)
        return y / jnp.maximum(s, 1e-12)
    if norm == "softmax":
        m = jnp.max(jnp.where(valid, y, -jnp.inf), axis=-1, keepdims=True)
        e = jnp.where(valid, jnp.exp(y - m), 0.0)
        return e / jnp.sum(e, axis=-1, keepdims=True)
    raise ValueError(f"unknown normalization: {norm}")


def _head_kernel(z_ref, w_ref, b_ref, o_ref, *, n_valid, norm):
    """Fused head: o = normalize(relu(z) @ w + b)  (nn.Sequential(ReLU, Linear)
    plus the GenEncoder normalization)."""
    z = jnp.maximum(z_ref[...], 0.0)
    y = jnp.dot(z, w_ref[...], preferred_element_type=jnp.float32) + b_ref[...]
    o_ref[...] = _apply_norm(y, n_valid, norm).astype(o_ref.dtype)


def _norm_only_kernel(z_ref, o_ref, *, n_valid, norm):
    """Normalization only (GenEncoder without an output layer)."""
    y = z_ref[...].astype(jnp.float32)
    o_ref[...] = _apply_norm(y, n_valid, norm).astype(o_ref.dtype)


# ---------------------------------------------------------------------------
# pallas_call wrappers
# ---------------------------------------------------------------------------

def conv_gemm_bias_relu(patches, w, b, *, tm=128):
    """relu(patches @ w + b) with lane-dense padded output and a parallel M grid."""
    m, k = patches.shape
    n = w.shape[1]
    k_pad = _round_up(k, 8)
    n_pad = _round_up(n, 128)
    tm, m_pad = _row_tiles(m, tm)

    x_p = jnp.pad(patches, ((0, m_pad - m), (0, k_pad - k)))
    w_p = jnp.pad(w, ((0, k_pad - k), (0, n_pad - n)))
    b_p = jnp.pad(b, (0, n_pad - n)).reshape(1, n_pad)

    out = pl.pallas_call(
        _gemm_bias_relu_kernel,
        out_shape=jax.ShapeDtypeStruct((m_pad, n_pad), jnp.float32),
        grid=(m_pad // tm,),
        in_specs=[
            pl.BlockSpec((tm, k_pad), lambda i: (i, 0)),
            pl.BlockSpec((k_pad, n_pad), lambda i: (0, 0)),   # grid-invariant weight
            pl.BlockSpec((1, n_pad), lambda i: (0, 0)),        # grid-invariant bias
        ],
        out_specs=pl.BlockSpec((tm, n_pad), lambda i: (i, 0)),
        compiler_params=pltpu.CompilerParams(dimension_semantics=("parallel",)),
    )(x_p, w_p, b_p)
    return out[:m, :n]


def head_linear_norm(z, w, b, norm, *, tm=128):
    """normalize(relu(z) @ w + b) — fused output head."""
    m, k = z.shape
    n = w.shape[1]
    k_pad = _round_up(k, 8)
    n_pad = _round_up(n, 128)
    tm, m_pad = _row_tiles(m, tm)

    z_p = jnp.pad(z, ((0, m_pad - m), (0, k_pad - k)))
    w_p = jnp.pad(w, ((0, k_pad - k), (0, n_pad - n)))
    b_p = jnp.pad(b, (0, n_pad - n)).reshape(1, n_pad)

    out = pl.pallas_call(
        functools.partial(_head_kernel, n_valid=n, norm=norm),
        out_shape=jax.ShapeDtypeStruct((m_pad, n_pad), jnp.float32),
        grid=(m_pad // tm,),
        in_specs=[
            pl.BlockSpec((tm, k_pad), lambda i: (i, 0)),
            pl.BlockSpec((k_pad, n_pad), lambda i: (0, 0)),
            pl.BlockSpec((1, n_pad), lambda i: (0, 0)),
        ],
        out_specs=pl.BlockSpec((tm, n_pad), lambda i: (i, 0)),
        compiler_params=pltpu.CompilerParams(dimension_semantics=("parallel",)),
    )(z_p, w_p, b_p)
    return out[:m, :n]


def normalize_only(z, norm, *, tm=128):
    """Normalization-only path (GenEncoder with no 'output_dim' in cfg)."""
    if norm is None:
        return z
    m, n = z.shape
    n_pad = _round_up(n, 128)
    tm, m_pad = _row_tiles(m, tm)
    z_p = jnp.pad(z, ((0, m_pad - m), (0, n_pad - n)))
    out = pl.pallas_call(
        functools.partial(_norm_only_kernel, n_valid=n, norm=norm),
        out_shape=jax.ShapeDtypeStruct((m_pad, n_pad), jnp.float32),
        grid=(m_pad // tm,),
        in_specs=[pl.BlockSpec((tm, n_pad), lambda i: (i, 0))],
        out_specs=pl.BlockSpec((tm, n_pad), lambda i: (i, 0)),
        compiler_params=pltpu.CompilerParams(dimension_semantics=("parallel",)),
    )(z_p)
    return out[:m, :n]


# ---------------------------------------------------------------------------
# Forward pass (glue: im2col / reshapes in the wrapper, compute in kernels)
# ---------------------------------------------------------------------------

def _im2col(x, k, stride):
    """x: (B, H, W, C) -> (B*Ho*Wo, k*k*C) patches; last-dim order is [ky, kx, c],
    matching a (k, k, Cin, Cout) weight reshaped to (k*k*Cin, Cout)."""
    b, h, w, c = x.shape
    ho = (h - k) // stride + 1
    wo = (w - k) // stride + 1
    cols = []
    for ky in range(k):
        for kx in range(k):
            cols.append(x[:, ky:ky + stride * ho:stride, kx:kx + stride * wo:stride, :])
    patches = jnp.concatenate(cols, axis=-1)
    return patches.reshape(b * ho * wo, k * k * c), ho, wo


def gen_encoder_forward(obs_nchw, params, cfg):
    """GenEncoder.forward: conv stack (valid padding, stride, ReLU) -> flatten ->
    optional (ReLU, Linear) head -> l1/l2/softmax/None normalization."""
    x = jnp.transpose(obs_nchw, (0, 2, 3, 1)).astype(jnp.float32)   # NCHW -> NHWC
    for (wgt, bia), k, s in zip(params["convs"], cfg["kernel_sizes"], cfg["strides"]):
        b_sz, _, _, c_in = x.shape
        patches, ho, wo = _im2col(x, k, s)
        w_gemm = wgt.reshape(k * k * c_in, -1)          # (k,k,Cin,Cout) -> (k*k*Cin, Cout)
        y = conv_gemm_bias_relu(patches, w_gemm, bia)   # fused conv-as-GEMM + bias + ReLU
        x = y.reshape(b_sz, ho, wo, -1)
    z = x.reshape(x.shape[0], -1)                       # GeneralConv2DEncoder flatten
    norm = cfg.get("normalization", None)
    if "output_dim" in cfg:
        return head_linear_norm(z, params["w_out"], params["b_out"], norm)
    return normalize_only(z, norm)


# ---------------------------------------------------------------------------
# Deterministic parameter init (PyTorch Linear/Conv-style U(-1/sqrt(fan_in), ...))
# ---------------------------------------------------------------------------

def init_params(key, obs_dim, cfg):
    c_in, h, w = obs_dim
    chans, ks, strides = cfg["channels"], cfg["kernel_sizes"], cfg["strides"]
    keys = jax.random.split(key, 2 * len(chans) + 2)
    convs = []
    c_prev, hh, ww = c_in, h, w
    for li, (c, k, s) in enumerate(zip(chans, ks, strides)):
        fan_in = c_prev * k * k
        bound = 1.0 / jnp.sqrt(fan_in)
        wgt = jax.random.uniform(keys[2 * li], (k, k, c_prev, c), jnp.float32, -bound, bound)
        bia = jax.random.uniform(keys[2 * li + 1], (c,), jnp.float32, -bound, bound)
        convs.append((wgt, bia))
        c_prev = c
        hh = (hh - k) // s + 1
        ww = (ww - k) // s + 1
    params = {"convs": convs}
    if "output_dim" in cfg:
        cnn_out = c_prev * hh * ww
        bound = 1.0 / jnp.sqrt(cnn_out)
        params["w_out"] = jax.random.uniform(keys[-2], (cnn_out, cfg["output_dim"]),
                                             jnp.float32, -bound, bound)
        params["b_out"] = jax.random.uniform(keys[-1], (cfg["output_dim"],),
                                             jnp.float32, -bound, bound)
    return params


# ---------------------------------------------------------------------------
# Pure-JAX reference (independent shifted-slice conv formulation)
# ---------------------------------------------------------------------------

def _reference(obs_nchw, params, cfg):
    x = jnp.transpose(obs_nchw, (0, 2, 3, 1)).astype(jnp.float32)
    for (wgt, bia), k, s in zip(params["convs"], cfg["kernel_sizes"], cfg["strides"]):
        b_sz, h, w, _ = x.shape
        ho = (h - k) // s + 1
        wo = (w - k) // s + 1
        y = jnp.zeros((b_sz, ho, wo, wgt.shape[-1]), jnp.float32) + bia
        for ky in range(k):
            for kx in range(k):
                xs = x[:, ky:ky + s * ho:s, kx:kx + s * wo:s, :]
                y = y + jnp.einsum("bhwc,co->bhwo", xs, wgt[ky, kx])
        x = jax.nn.relu(y)
    z = x.reshape(x.shape[0], -1)
    if "output_dim" in cfg:
        z = jax.nn.relu(z) @ params["w_out"] + params["b_out"]
    norm = cfg.get("normalization", None)
    if norm == "l1":
        z = z / jnp.maximum(jnp.sum(jnp.abs(z), axis=1, keepdims=True), 1e-12)
    elif norm == "l2":
        z = z / jnp.maximum(jnp.sqrt(jnp.sum(z * z, axis=1, keepdims=True)), 1e-12)
    elif norm == "softmax":
        z = jax.nn.softmax(z, axis=1)
    return z


if __name__ == "__main__":
    # Small deterministic example: obs (B=2, C=4, H=16, W=16),
    # two conv layers (16, 32 channels, 3x3, stride 2, ReLU),
    # output head -> 32 dims, l2 normalization (GenEncoder cfg).
    obs_dim = (4, 16, 16)
    cfg = dict(channels=[16, 32], kernel_sizes=[3, 3], strides=[2, 2],
               output_dim=32, normalization="l2")
    batch = 2

    key = jax.random.PRNGKey(0)
    k_obs, k_par = jax.random.split(key)
    obs = jax.random.normal(k_obs, (batch,) + obs_dim, jnp.float32)
    params = init_params(k_par, obs_dim, cfg)

    out = gen_encoder_forward(obs, params, cfg)
    jax.block_until_ready(out)

    ref = _reference(obs, params, cfg)
    assert out.shape == (batch, cfg["output_dim"]), out.shape
    max_err = float(jnp.max(jnp.abs(out - ref)))
    assert jnp.allclose(out, ref, atol=5e-5, rtol=5e-5), f"max_err={max_err}"
    print("KERNEL_OK")
</pallas_src>

<mosaic_0001>
module attributes {stable_mosaic.version = 11 : i64} {
  func.func @_gemm_bias_relu_kernel(%arg0: i32, %arg1: memref<104x40xf32, #tpu.memory_space<vmem>>, %arg2: memref<40x128xf32, #tpu.memory_space<vmem>>, %arg3: memref<1x128xf32, #tpu.memory_space<vmem>>, %arg4: memref<104x128xf32, #tpu.memory_space<vmem>>) attributes {dimension_semantics = [#tpu.dimension_semantics<parallel>], iteration_bounds = array<i64: 1>, scalar_prefetch = 0 : i64, scratch_operands = 0 : i64, tpu.core_type = #tpu.core_type<tc>, window_params = [{transform_indices = @transform_0, window_bounds = array<i64: 104, 40>}, {pipeline_mode = #tpu.pipeline_mode<synchronous>, transform_indices = @transform_1, window_bounds = array<i64: 40, 128>}, {pipeline_mode = #tpu.pipeline_mode<synchronous>, transform_indices = @transform_2, window_bounds = array<i64: 1, 128>}, {transform_indices = @transform_3, window_bounds = array<i64: 104, 128>}]} {
    %c0 = arith.constant 0 : index
    %c0_0 = arith.constant 0 : index
    %0 = vector.load %arg1[%c0, %c0_0] : memref<104x40xf32, #tpu.memory_space<vmem>>, vector<104x40xf32>
    %c0_1 = arith.constant 0 : index
    %c0_2 = arith.constant 0 : index
    %1 = vector.load %arg2[%c0_1, %c0_2] : memref<40x128xf32, #tpu.memory_space<vmem>>, vector<40x128xf32>
    %cst = arith.constant dense<0.000000e+00> : vector<104x128xf32>
    %2 = tpu.matmul %0, %1, %cst {dimension_numbers = #tpu.dot_dimension_numbers<[1], [0], [0], [1], [0, 0, 1, 1], [], []>} : vector<104x40xf32>, vector<40x128xf32>, vector<104x128xf32> -> vector<104x128xf32>
    %c0_3 = arith.constant 0 : index
    %c0_4 = arith.constant 0 : index
    %3 = vector.load %arg3[%c0_3, %c0_4] : memref<1x128xf32, #tpu.memory_space<vmem>>, vector<1x128xf32>
    %4 = vector.broadcast %3 : vector<1x128xf32> to vector<104x128xf32>
    %5 = arith.addf %2, %4 : vector<104x128xf32>
    %cst_5 = arith.constant 0.000000e+00 : f32
    %6 = vector.broadcast %cst_5 : f32 to vector<104x128xf32>
    %7 = arith.maximumf %5, %6 : vector<104x128xf32>
    %c0_6 = arith.constant 0 : index
    %c0_7 = arith.constant 0 : index
    %8 = vector.load %arg4[%c0_6, %c0_7] : memref<104x128xf32, #tpu.memory_space<vmem>>, vector<104x128xf32>
    tpu.vector_store %arg4[%c0_6, %c0_7], %7 {strides = array<i32>} : memref<104x128xf32, #tpu.memory_space<vmem>>, vector<104x128xf32>,
    return
  }
  func.func @transform_0(%arg0: i32) -> (i32, i32) {
    %c0_i32 = arith.constant 0 : i32
    %c0_i32_0 = arith.constant 0 : i32
    return %arg0, %c0_i32 : i32, i32
  }
  func.func @transform_1(%arg0: i32) -> (i32, i32) {
    %c0_i32 = arith.constant 0 : i32
    %c0_i32_0 = arith.constant 0 : i32
    %c0_i32_1 = arith.constant 0 : i32
    return %c0_i32, %c0_i32_0 : i32, i32
  }
  func.func @transform_2(%arg0: i32) -> (i32, i32) {
    %c0_i32 = arith.constant 0 : i32
    %c0_i32_0 = arith.constant 0 : i32
    %c0_i32_1 = arith.constant 0 : i32
    return %c0_i32, %c0_i32_0 : i32, i32
  }
  func.func @transform_3(%arg0: i32) -> (i32, i32) {
    %c0_i32 = arith.constant 0 : i32
    %c0_i32_0 = arith.constant 0 : i32
    return %arg0, %c0_i32 : i32, i32
  }
}

</mosaic_0001>

<bundles_post_ra>
// kernel: tpu_custom_call.1
= control target key start
LH: loop header
LB: loop body
LE: loop exit
PB: predicated region body
PF: predicated region fallthrough
CT: control target
= control target key end

     0   :  { %v375_v3 = vmov 0.0|0.0   ;;  %vm376_vm0 = vmmov 0   ;;  %v377_v6 = vmov 0.0   ;;  %s511_s0 = inlined_call_operand.vmem [shape: f32[104,40], index: 0, kind: input, shape index: {}]   ;;  %s512_s1 = inlined_call_operand.vmem [shape: f32[40,128], index: 1, kind: input, shape index: {}]   ;;  %s513_s2 = inlined_call_operand.vmem [shape: f32[1,128], index: 2, kind: input, shape index: {}]   ;;  %s514_s3 = inlined_call_operand.hbm [shape: f32[104,128], index: 3, kind: output, shape index: {}]  }
   0x1   :  { %v28_v0 = vld [vmem:[%s512_s1] sm:$0xff]  ;;  %v29_v1 = vld [vmem:[%s512_s1 + $0x8] sm:$0xff]  ;;  %v30_v2 = vld [vmem:[%s512_s1 + $0x10] sm:$0xff]  ;;  %333 = vmatprep.subr.bf16.mxu0 %v375_v3  ;;  %339 = vmatprep.subr.bf16.mxu1 %v375_v3 }
   0x2   :  { %v334_v4 = vpack.c.bf16 %v29_v1, %v28_v0  ;;  %v31_v5 = vld [vmem:[%s512_s1 + $0x18] sm:$0xff]  ;;  %294 = vmatprep.mubr.msk.f32.mxu0 %vm376_vm0, %v377_v6  ;;  %315 = vmatprep.mubr.msk.f32.mxu1 %vm376_vm0, %v377_v6 }
   0x3   :  { %v337_v7 = vpack.c.bf16 %v31_v5, %v30_v2 }
   0x4   :  { %335 = vmatpush3.bf16.msra.mxu0 %v334_v4  ;;  %342 = vmatpush3.bf16.msra.mxu1 %v334_v4 }
   0x5   :  { %336 = vmatprep.subr.bf16.mxu0 %v375_v3  ;;  %340 = vmatprep.subr.bf16.mxu1 %v375_v3 }
   0x6   :  { %8 = vsyncpa [#allocation3], 0  ;;  %v32_v8 = vld [vmem:[%s512_s1 + $0x20] sm:$0xff]  ;;  %vm40_vm1 = vcmask 326656   ;;  %v22_v10 = vld [vmem:[%s511_s0 + $0x38] sm:$0xff] }
   0x7   :  { %v15_v9 = vld [vmem:[%s511_s0] sm:$0xff]  ;;  %v16_v11 = vld [vmem:[%s511_s0 + $0x8] sm:$0xff]  ;;  %v17_v13 = vld [vmem:[%s511_s0 + $0x10] sm:$0xff] }
   0x8   :  { %338 = vmatpush3.bf16.msra.mxu0 %v337_v7  ;;  %343 = vmatpush3.bf16.msra.mxu1 %v337_v7  ;;  %v23_v12 = vld [vmem:[%s511_s0 + $0x40] sm:$0xff]  ;;  %v24_v14 = vld [vmem:[%s511_s0 + $0x48] sm:$0xff]  ;;  %v18_v15 = vld [vmem:[%s511_s0 + $0x18] sm:$0xff] }
   0x9   :  { %292 = vmatprep.subr.mxu0 %v377_v6  ;;  %341 = vmatprep.subr.mxu1 %v377_v6  ;;  %v25_v16 = vld [vmem:[%s511_s0 + $0x50] sm:$0xff]  ;;  %v19_v17 = vld [vmem:[%s511_s0 + $0x20] sm:$0xff]  ;;  %v26_v18 = vld [vmem:[%s511_s0 + $0x58] sm:$0xff] }
   0xa   :  { %v20_v19 = vld [vmem:[%s511_s0 + $0x28] sm:$0xff]  ;;  %v27_v20 = vld [vmem:[%s511_s0 + $0x60] sm:$0xff]  ;;  %v21_v21 = vld [vmem:[%s511_s0 + $0x30] sm:$0xff]  ;;  %s378_s0 = smov [#allocation2]  }
   0xb   :  { %v484_v22 = vld [vmem:[%s513_s2] ss:$0 sm:$0xff]  ;;  %s241_s2 = sshll.u32 %s378_s0, 4  ;;  %s242_s2 = int_to_ptr.vmem [resolvable:$true] %s241_s2 }
   0xc   :  { %293 = vmatpush3.msra.mxu0 %v32_v8  ;;  %344 = vmatpush3.msra.mxu1 %v32_v8  ;;  %s351_s22 = scalar_lea.vmem %s242_s2, 1664  ;;  %p356_p1 = scmp.lt.s32.totalorder %s242_s2, %s242_s2 }
   0xd   :  { %295 = vmatmul.mubr.msk.f32.vlgmr.msra.gmra.mrb[0].mxu0 %vm40_vm1, %v15_v9  ;;  %316 = vmatmul.mubr.msk.f32.vlgmr.msra.gmra.mrb[0].mxu1 %vm40_vm1, %v22_v10  ;;  %p352_p0 = scmp.ne.s32.totalorder %s242_s2, %s351_s22  ;;  %p357_p2 = scmp.lt.s32.totalorder %s351_s22, %s351_s22 }
   0xe   :  { %297 = vmatprep.mubr.msk.f32.mxu0 %vm376_vm0, %v377_v6  ;;  %318 = vmatprep.mubr.msk.f32.mxu1 %vm376_vm0, %v377_v6 }
   0xf   :  { %p358_p3 = por %p357_p2, %p356_p1 }
  0x11   :  { %298 = vmatmul.mubr.msk.f32.gmra.mrb[2].mxu0 %vm40_vm1, %v16_v11  ;;  %319 = vmatmul.mubr.msk.f32.gmra.mrb[2].mxu1 %vm40_vm1, %v23_v12  ;;  %p359_p4 = pnand %p358_p3, %p352_p0 }
  0x12   :  { %300 = vmatprep.mubr.msk.f32.mxu0 %vm376_vm0, %v377_v6  ;;  %321 = vmatprep.mubr.msk.f32.mxu1 %vm376_vm0, %v377_v6 }
  0x15   :  { %301 = vmatmul.mubr.msk.f32.gmra.mrb[4].mxu0 %vm40_vm1, %v17_v13  ;;  %322 = vmatmul.mubr.msk.f32.gmra.mrb[4].mxu1 %vm40_vm1, %v24_v14 }
  0x16   :  { %303 = vmatprep.mubr.msk.f32.mxu0 %vm376_vm0, %v377_v6  ;;  %324 = vmatprep.mubr.msk.f32.mxu1 %vm376_vm0, %v377_v6 }
  0x19   :  { %304 = vmatmul.mubr.msk.f32.gmra.mrb[6].mxu0 %vm40_vm1, %v18_v15  ;;  %325 = vmatmul.mubr.msk.f32.gmra.mrb[6].mxu1 %vm40_vm1, %v25_v16 }
  0x1a   :  { %306 = vmatprep.mubr.msk.f32.mxu0 %vm376_vm0, %v377_v6  ;;  %327 = vmatprep.mubr.msk.f32.mxu1 %vm376_vm0, %v377_v6 }
  0x1d   :  { %307 = vmatmul.mubr.msk.f32.gmra.mrb[8].mxu0 %vm40_vm1, %v19_v17  ;;  %328 = vmatmul.mubr.msk.f32.gmra.mrb[8].mxu1 %vm40_vm1, %v26_v18 }
  0x1e   :  { %309 = vmatprep.mubr.msk.f32.mxu0 %vm376_vm0, %v377_v6  ;;  %330 = vmatprep.mubr.msk.f32.mxu1 %vm376_vm0, %v377_v6 }
  0x21   :  { %310 = vmatmul.mubr.msk.f32.gmra.mrb[10].mxu0 %vm40_vm1, %v20_v19  ;;  %331 = vmatmul.mubr.msk.f32.gmra.mrb[10].mxu1 %vm40_vm1, %v27_v20 }
  0x22   :  { %312 = vmatprep.mubr.msk.f32.mxu0 %vm376_vm0, %v377_v6 }
  0x25   :  { %313 = vmatmul.mubr.msk.f32.gmra.mrb[12].mxu0 %vm40_vm1, %v21_v21 }
  0xe0   :  { %v146_v23 = vpop.f32.mrb[0].mxu0  ;;  %v181_v24 = vpop.f32.mrb[0].mxu1 }
  0xe1   :  { %v147_v25 = vadd.f32 %v484_v22, %v146_v23  ;;  %v296_v26 = vpop.f32.mrb[1].mxu0  ;;  %v182_v27 = vadd.f32 %v484_v22, %v181_v24  ;;  %v317_v28 = vpop.f32.mrb[1].mxu1 }
  0xe3   :  { %v210_v29 = vmax.f32 %v147_v25, 0.0  ;;  %v217_v30 = vmax.f32 %v182_v27, 0.0 }
  0xe4   :  { %v151_v31 = vpop.f32.mrb[2].mxu0  ;;  %v186_v32 = vpop.f32.mrb[2].mxu1 }
  0xe5   :  { %223 = vst [vmem:[#allocation2] sm:$0xff] %v210_v29  ;;  %230 = vst [vmem:[#allocation2 + $0x38] sm:$0xff] %v217_v30  ;;  %v152_v33 = vadd.f32 %v484_v22, %v151_v31  ;;  %v299_v34 = vpop.f32.mrb[3].mxu0  ;;  %v187_v35 = vadd.f32 %v484_v22, %v186_v32  ;;  %v320_v36 = vpop.f32.mrb[3].mxu1 }
  0xe7   :  { %v211_v37 = vmax.f32 %v152_v33, 0.0  ;;  %v218_v38 = vmax.f32 %v187_v35, 0.0 }
  0xe8   :  { %v156_v39 = vpop.f32.mrb[4].mxu0  ;;  %v191_v40 = vpop.f32.mrb[4].mxu1 }
  0xe9   :  { %224 = vst [vmem:[#allocation2 + $0x8] sm:$0xff] %v211_v37  ;;  %231 = vst [vmem:[#allocation2 + $0x40] sm:$0xff] %v218_v38  ;;  %v157_v41 = vadd.f32 %v484_v22, %v156_v39  ;;  %v302_v42 = vpop.f32.mrb[5].mxu0  ;;  %v192_v43 = vadd.f32 %v484_v22, %v191_v40  ;;  %v323_v44 = vpop.f32.mrb[5].mxu1 }
  0xeb   :  { %v212_v45 = vmax.f32 %v157_v41, 0.0  ;;  %v219_v46 = vmax.f32 %v192_v43, 0.0 }
  0xec   :  { %v161_v47 = vpop.f32.mrb[6].mxu0  ;;  %v196_v48 = vpop.f32.mrb[6].mxu1 }
  0xed   :  { %225 = vst [vmem:[#allocation2 + $0x10] sm:$0xff] %v212_v45  ;;  %232 = vst [vmem:[#allocation2 + $0x48] sm:$0xff] %v219_v46  ;;  %v162_v49 = vadd.f32 %v484_v22, %v161_v47  ;;  %v305_v50 = vpop.f32.mrb[7].mxu0  ;;  %v197_v51 = vadd.f32 %v484_v22, %v196_v48  ;;  %v326_v52 = vpop.f32.mrb[7].mxu1 }
  0xef   :  { %v213_v53 = vmax.f32 %v162_v49, 0.0  ;;  %v220_v54 = vmax.f32 %v197_v51, 0.0 }
  0xf0   :  { %v166_v55 = vpop.f32.mrb[8].mxu0  ;;  %v201_v56 = vpop.f32.mrb[8].mxu1 }
  0xf1   :  { %226 = vst [vmem:[#allocation2 + $0x18] sm:$0xff] %v213_v53  ;;  %233 = vst [vmem:[#allocation2 + $0x50] sm:$0xff] %v220_v54  ;;  %v167_v57 = vadd.f32 %v484_v22, %v166_v55  ;;  %v308_v58 = vpop.f32.mrb[9].mxu0  ;;  %v202_v59 = vadd.f32 %v484_v22, %v201_v56  ;;  %v329_v60 = vpop.f32.mrb[9].mxu1 }
  0xf3   :  { %v214_v61 = vmax.f32 %v167_v57, 0.0  ;;  %v221_v62 = vmax.f32 %v202_v59, 0.0 }
  0xf4   :  { %v171_v63 = vpop.f32.mrb[10].mxu0  ;;  %v206_v0 = vpop.f32.mrb[10].mxu1 }
  0xf5   :  { %227 = vst [vmem:[#allocation2 + $0x20] sm:$0xff] %v214_v61  ;;  %234 = vst [vmem:[#allocation2 + $0x58] sm:$0xff] %v221_v62  ;;  %v172_v1 = vadd.f32 %v484_v22, %v171_v63  ;;  %v311_v2 = vpop.f32.mrb[11].mxu0  ;;  %v207_v3 = vadd.f32 %v484_v22, %v206_v0  ;;  %v332_v4 = vpop.f32.mrb[11].mxu1 }
  0xf7   :  { %v215_v5 = vmax.f32 %v172_v1, 0.0  ;;  %v222_v6 = vmax.f32 %v207_v3, 0.0 }
  0xf8   :  { %v176_v7 = vpop.f32.mrb[12].mxu0 }
  0xf9   :  { %228 = vst [vmem:[#allocation2 + $0x28] sm:$0xff] %v215_v5  ;;  %235 = vst [vmem:[#allocation2 + $0x60] sm:$0xff] %v222_v6  ;;  %v177_v8 = vadd.f32 %v484_v22, %v176_v7  ;;  %v314_v9 = vpop.f32.mrb[13].mxu0 }
  0xfb   :  { %v216_v10 = vmax.f32 %v177_v8, 0.0 }
  0xfd   :  { %229 = vst [vmem:[#allocation2 + $0x30] sm:$0xff] %v216_v10 }
  0xfe   :  { %362 = shalt.err (!%p359_p4)
}
  0xff   :  { %s363_s25 = scalar_lea.hbm %s514_s3, 1664 }
 0x100   :  { %p364_p5 = scmp.ne.s32.totalorder %s514_s3, %s363_s25  ;;  %p367_p6 = scmp.lt.u32.totalorder %s363_s25, %s514_s3 }
 0x102   :  { %p369_p7 = pnand %p367_p6, %p364_p5 }
 0x104   :  { %372 = shalt.err (!%p369_p7)
}
 0x105   :  { %s379_s29 = smov 128   ;;  %s380_s30 = smov 8  }
 0x106   :  { %247 = dma.vmem_to_hbm [thread:$0]  %s242_s2, 1664, %s514_s3, [#allocation3], %s379_s29, %s379_s29, %s380_s30  }
 0x107   :  { %373 = dma.done.wait [#allocation3], 1664  }
 0x108   :  { %374 = vsyncadd [#allocation3], 4294965632 }
 0x109   :  { %251 = vsyncpa [#allocation3], 1 }

</bundles_post_ra>
